<compile_context>
chip_gen: v5e
topology: v5e:2x2
jax: 0.10.0
libtpu: 0.0.40
codegen_flags: <defaults>
</compile_context>

<pallas_src>
import functools

import jax
import jax.numpy as jnp
from jax.experimental import pallas as pl
from jax.experimental.pallas import tpu as pltpu


def _ls_loss_kernel(x_ref, t_ref, loss_ref, *, epsilon, ignore_index,
                    num_classes, tile_k, mask_k):
    """One (batch, T-tile, K-tile) cell of the label-smoothing NLL."""
    kk = pl.program_id(2)

    @pl.when(kk == 0)
    def _init():
        loss_ref[...] = jnp.zeros_like(loss_ref)

    x = x_ref[...]                                   # (1, tile_k, tile_t), input dtype
    t = t_ref[...]                                   # (1, 1, tile_t) int32

    # class ids for this K-tile, broadcast along lanes (no full-tile int32 iota)
    cls = jax.lax.broadcasted_iota(jnp.int32, (1, tile_k, 1), 1) + kk * tile_k

    if mask_k:
        # ragged last K-tile: zero garbage rows (where, so garbage can't NaN)
        x = jnp.where(cls < num_classes, x, jnp.zeros((), x.dtype))

    # target-class pick: exactly one (or zero) nonzero per lane column, so the
    # sum is exact in the input dtype; upcast only the (1,1,tile_t) result.
    picked = jnp.sum(jnp.where(cls == t, x, jnp.zeros((), x.dtype)),
                     axis=1, keepdims=True).astype(jnp.float32)

    contrib = (1.0 - epsilon) * picked               # (1, 1, tile_t) f32

    if epsilon != 0.0:
        # class-sum on the MXU (frees the VALU slot), f32 accumulation.
        ones = jnp.ones((1, tile_k), x.dtype)
        sum_all = jax.lax.dot_general(
            ones, x[0], (((1,), (0,)), ((), ())),
            preferred_element_type=jnp.float32)      # (1, tile_t)
        contrib = contrib + (epsilon / num_classes) * sum_all[None]

    loss_ref[...] += contrib

    @pl.when(kk == pl.num_programs(2) - 1)
    def _finish():
        # zero ignored positions; negate the accumulated weighted log-prob sum
        loss_ref[...] = jnp.where(t != ignore_index, -loss_ref[...], 0.0)


def _pick_tiles(batch, num_classes, seq_len, itemsize):
    """Generation-aware tile sizes + matching VMEM limit.

    Returns (tile_k, tile_t, vmem_limit_bytes).  tile_k is either the full K
    or a multiple of 8; tile_t is either the full T or a multiple of 128.
    """
    try:
        vmem_cap = int(pltpu.get_tpu_info().vmem_capacity_bytes)
    except Exception:
        vmem_cap = 64 * 1024 * 1024          # conservative fallback (v7x per-core)

    # per x-tile budget (~1/16 of VMEM leaves room for double buffering,
    # the select temporary, outputs and headroom)
    budget = max(1 << 20, vmem_cap // 16)

    def _round_down(v, m):
        return max(m, (v // m) * m)

    full_k_lanes = budget // max(1, num_classes * itemsize)
    if full_k_lanes >= min(seq_len, 128):
        # whole class dim fits in one tile -> no K reduction axis
        tile_k = num_classes
        tile_t = seq_len if seq_len <= full_k_lanes else _round_down(full_k_lanes, 128)
    else:
        # vocab-scale K: tile the class dim too (innermost reduction grid axis)
        if seq_len * itemsize * 8 <= budget:
            tile_t = seq_len                 # contiguous (tile_k, T) HBM rows
        else:
            tile_t = _round_down(budget // (8 * itemsize), 128)
        tile_k = min(num_classes, _round_down(budget // (tile_t * itemsize), 8))
        if num_classes % tile_k != 0:
            # snap down to a divisor of K if one exists (avoids ragged-K mask)
            cand = tile_k
            while cand >= 8 and num_classes % cand != 0:
                cand -= 8
            if cand >= 8:
                tile_k = cand

    # v7x has two TensorCores: make sure the parallel grid has >= 2 cells
    if batch == 1 and tile_t >= seq_len and seq_len >= 256:
        tile_t = _round_down((seq_len + 1) // 2, 128)

    x_tile_bytes = tile_k * tile_t * itemsize
    vmem_limit = min(vmem_cap * 3 // 4, max(32 << 20, 6 * x_tile_bytes))
    return int(tile_k), int(tile_t), int(vmem_limit)


def label_smoothing_loss(logits, target, *, ignore_index, eos_id=None,
                         epsilon=0.0):
    """logits: (B, K, T) float; target: (B, T) int. Returns scalar f32 loss."""
    del eos_id  # stored but unused in the PyTorch forward
    B, K, T = logits.shape
    itemsize = jnp.dtype(logits.dtype).itemsize

    tile_k, tile_t, vmem_limit = _pick_tiles(B, K, T, itemsize)
    n_t = pl.cdiv(T, tile_t)
    n_k = pl.cdiv(K, tile_k)
    mask_k = (K % tile_k) != 0

    # targets: tiny array -- cheap reshape/cast; logits are consumed as-is.
    tgt = target.reshape(B, 1, T).astype(jnp.int32)

    kernel = functools.partial(
        _ls_loss_kernel,
        epsilon=float(epsilon),
        ignore_index=int(ignore_index),
        num_classes=int(K),
        tile_k=int(tile_k),
        mask_k=bool(mask_k))

    loss_out = pl.pallas_call(
        kernel,
        out_shape=jax.ShapeDtypeStruct((B, 1, T), jnp.float32),
        grid_spec=pltpu.PrefetchScalarGridSpec(
            num_scalar_prefetch=0,
            grid=(B, n_t, n_k),
            in_specs=[
                pl.BlockSpec((1, tile_k, tile_t), lambda b, tt, kk: (b, kk, tt)),
                pl.BlockSpec((1, 1, tile_t), lambda b, tt, kk: (b, 0, tt)),
            ],
            out_specs=pl.BlockSpec((1, 1, tile_t), lambda b, tt, kk: (b, 0, tt)),
        ),
        compiler_params=pltpu.CompilerParams(
            dimension_semantics=("parallel", "parallel", "arbitrary"),
            vmem_limit_bytes=vmem_limit),
    )(logits, tgt)

    # exact integer denominator computed on the tiny target array (no extra
    # per-position f32 output stream / re-read)
    n_valid = jnp.sum(target != ignore_index)
    return jnp.sum(loss_out) / n_valid.astype(jnp.float32)


def _reference_loss(logits, target, ignore_index, epsilon):
    """Pure-JAX transcription of the PyTorch forward (for verification)."""
    x = jnp.transpose(logits, (0, 2, 1)).astype(jnp.float32)   # (B, T, K)
    k = x.shape[2]
    tp = jnp.full_like(x, epsilon / k)
    onehot = jax.nn.one_hot(target, k, dtype=bool)
    tp = jnp.where(onehot, 1.0 - epsilon + epsilon / k, tp)
    loss = -(tp * x).sum(2)                                    # (B, T)
    m = (target != ignore_index).astype(x.dtype)
    return (loss * m).sum() / m.sum()


if __name__ == "__main__":
    B, K, T = 2, 32, 128
    IGNORE, EOS, EPS = 0, 1, 0.1

    key = jax.random.PRNGKey(0)
    k1, k2 = jax.random.split(key)
    # fake log-probs with class dim = 1, matching PyTorch's (B, K, T)
    logits = jax.nn.log_softmax(
        jax.random.normal(k1, (B, K, T), dtype=jnp.float32), axis=1)
    target = jax.random.randint(k2, (B, T), 0, K, dtype=jnp.int32)
    # sprinkle some ignore_index positions
    target = target.at[0, -3:].set(IGNORE).at[1, -1].set(IGNORE)

    out = label_smoothing_loss(logits, target, ignore_index=IGNORE,
                               eos_id=EOS, epsilon=EPS)
    out = jax.block_until_ready(out)

    ref = _reference_loss(logits, target, IGNORE, EPS)
    assert jnp.allclose(out, ref, rtol=1e-4, atol=1e-4), (out, ref)
    print("KERNEL_OK")
</pallas_src>

<mosaic_0001>
module attributes {stable_mosaic.version = 11 : i64} {
  func.func @_ls_loss_kernel(%arg0: i32, %arg1: i32, %arg2: i32, %arg3: memref<1x32x128xf32, #tpu.memory_space<vmem>>, %arg4: memref<1x1x128xi32, #tpu.memory_space<vmem>>, %arg5: memref<1x1x128xf32, #tpu.memory_space<vmem>>) attributes {dimension_semantics = [#tpu.dimension_semantics<parallel>, #tpu.dimension_semantics<parallel>, #tpu.dimension_semantics<arbitrary>], iteration_bounds = array<i64: 2, 1, 1>, scalar_prefetch = 0 : i64, scratch_operands = 0 : i64, tpu.core_type = #tpu.core_type<tc>, window_params = [{transform_indices = @transform_0, window_bounds = array<i64: 1, 32, 128>}, {transform_indices = @transform_1, window_bounds = array<i64: 1, 1, 128>}, {transform_indices = @transform_2, window_bounds = array<i64: 1, 1, 128>}]} {
    %c0_i32 = arith.constant 0 : i32
    %0 = arith.cmpi eq, %arg2, %c0_i32 : i32
    %1 = arith.extui %0 : i1 to i32
    %c0_i32_0 = arith.constant 0 : i32
    %2 = arith.cmpi ne, %1, %c0_i32_0 : i32
    scf.if %2 {
      %cst_19 = arith.constant 0.000000e+00 : f32
      %31 = vector.broadcast %cst_19 : f32 to vector<1x1x128xf32>
      %c0_20 = arith.constant 0 : index
      %c0_21 = arith.constant 0 : index
      %c0_22 = arith.constant 0 : index
      %32 = vector.load %arg5[%c0_20, %c0_21, %c0_22] : memref<1x1x128xf32, #tpu.memory_space<vmem>>, vector<1x1x128xf32>
      tpu.vector_store %arg5[%c0_20, %c0_21, %c0_22], %31 {strides = array<i32>} : memref<1x1x128xf32, #tpu.memory_space<vmem>>, vector<1x1x128xf32>,
    } else {
    }
    %c0 = arith.constant 0 : index
    %c0_1 = arith.constant 0 : index
    %c0_2 = arith.constant 0 : index
    %3 = vector.load %arg3[%c0, %c0_1, %c0_2] : memref<1x32x128xf32, #tpu.memory_space<vmem>>, vector<1x32x128xf32>
    %c0_3 = arith.constant 0 : index
    %c0_4 = arith.constant 0 : index
    %c0_5 = arith.constant 0 : index
    %4 = vector.load %arg4[%c0_3, %c0_4, %c0_5] : memref<1x1x128xi32, #tpu.memory_space<vmem>>, vector<1x1x128xi32>
    %5 = tpu.iota {dimensions = array<i32: 1>} : vector<1x32x1xi32>
    %c32_i32 = arith.constant 32 : i32
    %6 = arith.muli %arg2, %c32_i32 : i32
    %7 = vector.broadcast %6 : i32 to vector<1x32x1xi32>
    %8 = arith.addi %5, %7 : vector<1x32x1xi32>
    %9 = vector.broadcast %8 : vector<1x32x1xi32> to vector<1x32x128xi32>
    %10 = vector.broadcast %4 : vector<1x1x128xi32> to vector<1x32x128xi32>
    %11 = arith.cmpi eq, %9, %10 : vector<1x32x128xi32>
    %cst = arith.constant 0.000000e+00 : f32
    %12 = vector.broadcast %cst : f32 to vector<1x32x128xf32>
    %13 = arith.select %11, %3, %12 : vector<1x32x128xi1>, vector<1x32x128xf32>
    %cst_6 = arith.constant dense<0.000000e+00> : vector<1x128xf32>
    %14 = vector.multi_reduction <add>, %13, %cst_6 [1] : vector<1x32x128xf32> to vector<1x128xf32>
    %15 = vector.shape_cast %14 : vector<1x128xf32> to vector<1x1x128xf32>
    %cst_7 = arith.constant 0.899999976 : f32
    %16 = vector.broadcast %cst_7 : f32 to vector<1x1x128xf32>
    %17 = arith.mulf %16, %15 : vector<1x1x128xf32>
    %cst_8 = arith.constant 1.000000e+00 : f32
    %18 = vector.broadcast %cst_8 : f32 to vector<1x32xf32>
    %19 = vector.shape_cast %3 : vector<1x32x128xf32> to vector<32x128xf32>
    %cst_9 = arith.constant dense<0.000000e+00> : vector<1x128xf32>
    %20 = tpu.matmul %18, %19, %cst_9 {dimension_numbers = #tpu.dot_dimension_numbers<[1], [0], [0], [1], [0, 0, 1, 1], [], []>} : vector<1x32xf32>, vector<32x128xf32>, vector<1x128xf32> -> vector<1x128xf32>
    %21 = vector.shape_cast %20 : vector<1x128xf32> to vector<1x1x128xf32>
    %cst_10 = arith.constant 3.125000e-03 : f32
    %22 = vector.broadcast %cst_10 : f32 to vector<1x1x128xf32>
    %23 = arith.mulf %22, %21 : vector<1x1x128xf32>
    %24 = arith.addf %17, %23 : vector<1x1x128xf32>
    %c0_11 = arith.constant 0 : index
    %c0_12 = arith.constant 0 : index
    %c0_13 = arith.constant 0 : index
    %25 = vector.load %arg5[%c0_11, %c0_12, %c0_13] : memref<1x1x128xf32, #tpu.memory_space<vmem>>, vector<1x1x128xf32>
    %26 = arith.addf %25, %24 : vector<1x1x128xf32>
    %c0_14 = arith.constant 0 : index
    %c0_15 = arith.constant 0 : index
    %c0_16 = arith.constant 0 : index
    %27 = vector.load %arg5[%c0_14, %c0_15, %c0_16] : memref<1x1x128xf32, #tpu.memory_space<vmem>>, vector<1x1x128xf32>
    tpu.vector_store %arg5[%c0_14, %c0_15, %c0_16], %26 {strides = array<i32>} : memref<1x1x128xf32, #tpu.memory_space<vmem>>, vector<1x1x128xf32>,
    %c0_i32_17 = arith.constant 0 : i32
    %28 = arith.cmpi eq, %arg2, %c0_i32_17 : i32
    %29 = arith.extui %28 : i1 to i32
    %c0_i32_18 = arith.constant 0 : i32
    %30 = arith.cmpi ne, %29, %c0_i32_18 : i32
    scf.if %30 {
      %c0_i32_19 = arith.constant 0 : i32
      %31 = vector.broadcast %c0_i32_19 : i32 to vector<1x1x128xi32>
      %32 = arith.cmpi ne, %4, %31 : vector<1x1x128xi32>
      %c0_20 = arith.constant 0 : index
      %c0_21 = arith.constant 0 : index
      %c0_22 = arith.constant 0 : index
      %33 = vector.load %arg5[%c0_20, %c0_21, %c0_22] : memref<1x1x128xf32, #tpu.memory_space<vmem>>, vector<1x1x128xf32>
      %cst_23 = arith.constant 0.000000e+00 : f32
      %34 = vector.broadcast %cst_23 : f32 to vector<1x1x128xf32>
      %35 = arith.subf %34, %33 : vector<1x1x128xf32>
      %cst_24 = arith.constant 0.000000e+00 : f32
      %36 = vector.broadcast %cst_24 : f32 to vector<1x1x128xf32>
      %37 = arith.select %32, %35, %36 : vector<1x1x128xi1>, vector<1x1x128xf32>
      %c0_25 = arith.constant 0 : index
      %c0_26 = arith.constant 0 : index
      %c0_27 = arith.constant 0 : index
      %38 = vector.load %arg5[%c0_25, %c0_26, %c0_27] : memref<1x1x128xf32, #tpu.memory_space<vmem>>, vector<1x1x128xf32>
      tpu.vector_store %arg5[%c0_25, %c0_26, %c0_27], %37 {strides = array<i32>} : memref<1x1x128xf32, #tpu.memory_space<vmem>>, vector<1x1x128xf32>,
    } else {
    }
    return
  }
  func.func @transform_0(%arg0: i32, %arg1: i32, %arg2: i32) -> (i32, i32, i32) {
    %c0_i32 = arith.constant 0 : i32
    return %arg0, %arg2, %arg1 : i32, i32, i32
  }
  func.func @transform_1(%arg0: i32, %arg1: i32, %arg2: i32) -> (i32, i32, i32) {
    %c0_i32 = arith.constant 0 : i32
    %c0_i32_0 = arith.constant 0 : i32
    return %arg0, %c0_i32, %arg1 : i32, i32, i32
  }
  func.func @transform_2(%arg0: i32, %arg1: i32, %arg2: i32) -> (i32, i32, i32) {
    %c0_i32 = arith.constant 0 : i32
    %c0_i32_0 = arith.constant 0 : i32
    return %arg0, %c0_i32, %arg1 : i32, i32, i32
  }
}

</mosaic_0001>

<bundles_post_ra>
// kernel: tpu_custom_call.1
= control target key start
LH: loop header
LB: loop body
LE: loop exit
PB: predicated region body
PF: predicated region fallthrough
CT: control target
= control target key end

     0   :  { %7 = vsyncpa [#allocation3], 0  ;;  %s826_s0 = inlined_call_operand.hbm [shape: f32[2,32,128], index: 0, kind: input, shape index: {}]   ;;  %s827_s1 = inlined_call_operand.hbm [shape: s32[2,1,128], index: 1, kind: input, shape index: {}]   ;;  %s828_s2 = inlined_call_operand.hbm [shape: f32[2,1,128], index: 2, kind: output, shape index: {}]  }
   0x1   :  { %9 = vsyncpa [#allocation3 + $0x1], 0 }
   0x2   :  { %10 = vsyncpa [#allocation6], 0 }
   0x3   :  { %12 = vsyncpa [#allocation6 + $0x1], 0 }
   0x4   :  { %13 = vsyncpa [#allocation4], 0 }
   0x5   :  { %15 = vsyncpa [#allocation4 + $0x1], 0  ;;  %s675_s9 = smov 0   ;;  %s677_s10 = smov 0  }
   0x6   :  { %s679_s11 = smov 0   ;;  %s681_s12 = smov 0  }
   0x7   :  { %s683_s13 = smov 0   ;;  %s685_s14 = smov 0  }
   0x8 LB: > { %s423_s15 = sadd.s32 4294967295, %s654_s14   ;;  %s424_s16 = sadd.s32 4294967294, %s654_s14   ;;  %s654_s14 = sphi %s685_s14, %s21_s14   ;;  %s650_s13 = sphi %s683_s13, %s838_s13   ;;  %s646_s12 = sphi %s681_s12, %s837_s12   ;;  %s642_s11 = sphi %s679_s11, %s836_s11   ;;  %s638_s10 = sphi %s677_s10, %s835_s10   ;;  %s634_s9 = sphi %s675_s9, %s834_s9  }
   0x9   : > { %s40_s17 = sadd.s32 1, %s650_s13  ;;  %s51_s18 = sadd.s32 1, %s642_s11 }
   0xa   : > { %p42_p0 = scmp.ge.s32.totalorder %s40_s17, 2  ;;  %p58_p1 = scmp.ne.s32.totalorder %s642_s11, %s638_s10 }
   0xb   : > { %p59_p2 = scmp.eq.s32.totalorder %s654_s14, 0  ;;  %p64_p3 = scmp.ne.s32.totalorder %s638_s10, %s634_s9 }
   0xc   : > { %s840_s17 = smov (%p42_p0, %s40_s17), 0  ;;  %p65_p5 = scmp.eq.s32.totalorder %s423_s15, 0 }
   0xd   : > { %p716_p4 = por %p59_p2, %p58_p1  ;;  %s44_s20 = ssub.s32 %s650_s13, %s840_s17 }
   0xe   : > { %p118_p6 = scmp.eq.s32.totalorder %s423_s15, 1  ;;  %p49_p7 = scmp.eq.s32.totalorder %s44_s20, 0 }
   0xf   : > { %p722_p8 = por %p65_p5, %p64_p3  ;;  %p124_p10 = scmp.eq.s32.totalorder %s424_s16, 1 }
  0x10   : > { %p726_p9 = por %p118_p6, %p58_p1  ;;  %p426_p12 = scmp.ge.s32.totalorder %s654_s14, 2 }
  0x11   : > { %s731_s23 = scalar_select %p49_p7, %s642_s11, %s51_s18  }
  0x12   : > { %p733_p11 = por %p124_p10, %p64_p3  ;;  %p453_p13 = scmp.lt.s32.totalorder %s654_s14, 2 }
  0x13   : > { %s144_s25 = sand.u32 1, %s642_s11   ;;  %s435_s27 = sshll.u32 %s650_s13, 5 }
  0x14   : > { %s427_s26 = sshll.u32 %s144_s25, 5  ;;  %s156_s30 = scalar_lea.hbm %s826_s0, %s435_s27 }
  0x15   : > { %s148_s3 = scalar_lea.vmem [#allocation2], %s427_s26  ;;  %s157_s5 = sshll.u32 %s156_s30, 4  ;;  %s158_s5 = int_to_ptr.hbm [resolvable:$true] %s157_s5 }
  0x16   : > { %s159_s4 = sshll.u32 %s148_s3, 4  ;;  %p746_p0 = pnand %p453_p13, %p716_p4  ;;  %s160_s4 = int_to_ptr.vmem [resolvable:$true] %s159_s4 }
  0x17   : > { %p430_p1 = scmp.ge.s32.totalorder %s654_s14, 1  ;;  %s145_s7 = scalar_lea.sflag [#allocation3], %s144_s25 }
  0x18   : > { %s656_s8 = smov 128   ;;  %s657_s15 = smov 8  }
  0x19   : > { %445 = dma.hbm_to_vmem [thread:$0]  (!%p746_p0), %s158_s5, 512, %s160_s4, %s145_s7, %s656_s8, %s656_s8, %s657_s15  }
  0x1a   : > { %p185_p2 = scmp.lt.s32.totalorder %s654_s14, 3  ;;  %s176_s20 = scalar_lea.hbm %s827_s1, %s650_s13 }
  0x1b   : > { %s178_s26 = sshll.u32 %s176_s20, 4  ;;  %s172_s19 = scalar_lea.vmem [#allocation5], %s144_s25  ;;  %s179_s26 = int_to_ptr.hbm [resolvable:$true] %s178_s26 }
  0x1c   : > { %p186_p3 = pnand %p430_p1, %p185_p2  ;;  %s180_s27 = sshll.u32 %s172_s19, 4  ;;  %s181_s27 = int_to_ptr.vmem [resolvable:$true] %s180_s27 }
  0x1d   : > { %s170_s28 = scalar_lea.sflag [#allocation6], %s144_s25  ;;  %s761_s29 = sand.u32 (!%p186_p3), 1, %s638_s10  }
  0x1e   : > { %448 = dma.hbm_to_vmem [thread:$0]  (!%p746_p0), %s179_s26, 16, %s181_s27, %s170_s28  }
  0x1f   : > { %189 = sbr.rel (%p186_p3) target bundleno = 193 (0xc1), region = 28  ;;  %s431_s30 = sshll.u32 (!%p186_p3), %s761_s29, 5 }
  0x20   : > { %s192_s3 = scalar_lea.sflag (!%p186_p3), [#allocation3], %s761_s29  ;;  %s195_s4 = scalar_lea.vmem (!%p186_p3), [#allocation2], %s431_s30 }
  0x24   : > { %621 = dma.done.wait (%p722_p8), %s192_s3, 512  }
  0x25   : > { %623 = vsyncadd (%p722_p8), %s192_s3, 4294966784  ;;  %s202_s25 = scalar_lea.sflag [#allocation6], %s761_s29  ;;  %s204_s5 = scalar_lea.vmem [#allocation5], %s761_s29 }
  0x26   : > { %625 = dma.done.wait (%p722_p8), %s202_s25, 16  }
  0x27   : > { %627 = vsyncadd (%p722_p8), %s202_s25, 4294967280  ;;  %v240_v0 = vlaneseq  ;;  %s776_s6 = scalar_lea.vmem [#allocation7], %s761_s29  ;;  %v658_v1 = vmov 0.0   ;;  %v238_v6 = vld [vmem:[%s195_s4 + $0x18] sm:$0xff]  ;;  %v507_v7 = vld [vmem:[%s204_s5] ss:$0 sm:$0xff]  ;;  %s317_s8 = scalar_lea.hbm %s828_s2, %s646_s12 }
  0x28   : > { %234 = vst [vmem:[%s776_s6] sm:$0x1] %v658_v1  ;;  %286 = vmatpush.msra.mxu0 %v238_v6  ;;  %v237_v8 = vld [vmem:[%s195_s4 + $0x10] sm:$0xff]  ;;  %v236_v9 = vld [vmem:[%s195_s4 + $0x8] sm:$0xff]  ;;  %v235_v10 = vld [vmem:[%s195_s4] sm:$0xff]  ;;  %vm270_vm4 = vcmask 261120   ;;  %v659_v18 = vmov 1.0  }
  0x29   : > { %v241_v2 = vshrl.u32 %v240_v0, 7  ;;  %v239_v31 = vld [vmem:[%s204_s5] sm:$0x1]  ;;  %s319_s15 = sshll.u32 %s776_s6, 4  ;;  %s321_s16 = sshll.u32 %s317_s8, 4  ;;  %s320_s15 = int_to_ptr.vmem [resolvable:$true] %s319_s15  ;;  %s322_s16 = int_to_ptr.hbm [resolvable:$true] %s321_s16 }
  0x2a   : > { %287 = vmatpush.msra.mxu0 %v237_v8  ;;  %vm302_vm5 = vcmp.ne.s32.totalorder %v239_v31, 0  ;;  %s308_s18 = scalar_lea.sflag [#allocation4], %s761_s29  ;;  %s582_s20 = sshra.s32 %s322_s16, 4  ;;  %s583_s20 = int_to_ptr.hbm [resolvable:$true] %s582_s20 }
  0x2b   : > { %v244_v3 = vadd.s32 24, %v241_v2  ;;  %v243_v4 = vadd.s32 16, %v241_v2  ;;  %v242_v5 = vadd.s32 8, %v241_v2  ;;  %vm252_vm3 = vcmp.eq.s32.totalorder %v241_v2, %v507_v7  ;;  %s584_s26 = scalar_lea.hbm %s583_s20, 1  ;;  %s588_s27 = scalar_lea.hbm %s828_s2, 2 }
  0x2c   : > { %v256_v13 = vsel %vm252_vm3, %v235_v10, 0.0  ;;  %288 = vmatpush.msra.mxu0 %v236_v9  ;;  %p585_p4 = scmp.ne.s32.totalorder %s583_s20, %s584_s26  ;;  %p589_p7 = scmp.lt.s32.totalorder %s583_s20, %s828_s2 }
  0x2d   : > { %vm255_vm0 = vcmp.eq.s32.totalorder %v244_v3, %v507_v7  ;;  %vm254_vm1 = vcmp.eq.s32.totalorder %v243_v4, %v507_v7  ;;  %vm253_vm2 = vcmp.eq.s32.totalorder %v242_v5, %v507_v7  ;;  %p590_p8 = scmp.lt.s32.totalorder %s588_s27, %s584_s26 }
  0x2e   : > { %v258_v11 = vsel %vm254_vm1, %v237_v8, 0.0  ;;  %v257_v12 = vsel %vm253_vm2, %v236_v9, 0.0  ;;  %v259_v15 = vsel %vm255_vm0, %v238_v6, 0.0  ;;  %289 = vmatpush.msra.mxu0 %v235_v10  ;;  %p586_p5 = pnand %p585_p4, %p726_p9 }
  0x2f   : > { %v260_v14 = vadd.f32 %v257_v12, %v256_v13  ;;  %432 = vmatmul.msk.f32.vlgmr.msra.gmra.mxu0 %vm270_vm4, %v659_v18  ;;  %v296_v28 = vld [vmem:[%s776_s6] sm:$0x1]  ;;  %p591_p10 = por %p590_p8, %p589_p7 }
  0x30   : > { %p587_p6 = pneg %p586_p5 }
  0x31   : > { %v261_v16 = vadd.f32 %v260_v14, %v258_v11 }
  0x32   : > { %p592_p13 = pnand %p591_p10, %p587_p6 }
  0x33   : > { %v262_v17 = vadd.f32 %v261_v16, %v259_v15 }
  0x35   : > { %v263_v19 = vrot.slane %v262_v17, 4 }
  0x37   : > { %v264_v20 = vadd.f32 %v263_v19, %v262_v17 }
  0x39   : > { %v265_v21 = vrot.slane %v264_v20, 2 }
  0x3b   : > { %v266_v22 = vadd.f32 %v265_v21, %v264_v20 }
  0x3d   : > { %v267_v23 = vrot.slane %v266_v22, 1 }
  0x3f   : > { %v268_v24 = vadd.f32 %v267_v23, %v266_v22 }
  0x41   : > { %v269_v25 = vmul.f32 0.9, %v268_v24 }
  0xac   : > { %v291_v26 = vpop.f32.mrf.mxu0 }
  0xad   : > { %v294_v27 = vmul.f32 0.003125, %v291_v26 }
  0xaf   : > { %v295_v29 = vadd.f32 %v294_v27, %v269_v25 }
  0xb1   : > { %v297_v30 = vadd.f32 %v296_v28, %v295_v29 }
  0xb3   : > { %298 = vst [vmem:[%s776_s6] sm:$0x1] %v297_v30 }
  0xba   : > { %v303_v32 = vld [vmem:[%s776_s6] sm:$0x1] }
  0xbb   : > { %v304_v33 = vsub.f32 0.0, %v303_v32 }
  0xbd   : > { %v305_v34 = vsel %vm302_vm5, %v304_v33, 0.0 }
  0xbe   : > { %306 = vst [vmem:[%s776_s6] sm:$0x1] %v305_v34 }
  0xbf   : > { %595 = shalt.err (!%p592_p13)
}
  0xc0   : > { %440 = dma.vmem_to_hbm [thread:$0]  (%p726_p9), %s320_s15, 16, %s322_s16, %s308_s18  }
  0xc1 PF: > { %s333_s29 = sand.u32 1, %s634_s9   ;;  %p450_p0 = pnand %p426_p12, %p733_p11 }
  0xc2   : > { %s334_s3 = scalar_lea.sflag [#allocation4], %s333_s29 }
  0xc3   : > { %p451_p1 = pneg %p450_p0 }
  0xc5   : > { %629 = dma.done.wait (%p451_p1), %s334_s3, 16  }
  0xc6   : > { %631 = vsyncadd (%p451_p1), %s334_s3, 4294967280  ;;  %s21_s14 = sadd.s32 1, %s654_s14   ;;  %s834_s9 = smov %s638_s10 }
  0xc7   : > { %p18_p2 = scmp.ge.s32.totalorder %s21_s14, 4   ;;  %s835_s10 = smov %s642_s11 }
  0xc8   : > { %s836_s11 = smov %s731_s23  ;;  %s837_s12 = smov %s650_s13 }
  0xc9   : > { %s838_s13 = smov %s840_s17  ;;  %20 = sbr.rel (!%p18_p2) target bundleno = 8 (0x8), region = 94 }
  0xce   :  { %339 = vsyncpa [#allocation3], 1 }
  0xcf   :  { %341 = vsyncpa [#allocation3 + $0x1], 1 }
  0xd0   :  { %342 = vsyncpa [#allocation6], 1 }
  0xd1   :  { %344 = vsyncpa [#allocation6 + $0x1], 1 }
  0xd2   :  { %345 = vsyncpa [#allocation4], 1 }
  0xd3   :  { %347 = vsyncpa [#allocation4 + $0x1], 1 }

</bundles_post_ra>
